<compile_context>
chip_gen: v7x
topology: tpu7x:2x2x1
jax: 0.10.0
libtpu: 0.0.40
codegen_flags: <defaults>
</compile_context>

<pallas_src>
import functools

import numpy as np
import jax
import jax.numpy as jnp
from jax.experimental import pallas as pl
from jax.experimental.pallas import tpu as pltpu


def _pair(v):
    return (v, v) if isinstance(v, int) else tuple(v)


@functools.lru_cache(maxsize=None)
def _fold_scatter_mats(M, H, W, KH, KW, SH, SW, PH, PW, DH, DW, LH, LW):
    """One-hot scatter matrices for fold, built once per geometry (cached).

    Returns:
      at: (M*H, KH*M*LH) bf16  block-diagonal row scatter: (kh, m, lh) -> (m, h)
      b : (KW*LW, W)     bf16  column scatter:             (kw, lw)    -> w
    0/1 values are exact in bf16; they are upcast to the operand dtype inside
    the kernel (VPU cast), halving the already-tiny constant DMA vs f32.
    """
    # B[(kw*LW + lw), w] = 1 iff w == lw*SW - PW + kw*DW and 0 <= w < W
    q = np.arange(KW * LW)
    kw = q // LW
    lw = q % LW
    ow = lw * SW - PW + kw * DW
    bval = (ow >= 0) & (ow < W)
    b = np.zeros((KW * LW, W), np.float32)
    b[q[bval], ow[bval]] = 1.0

    # A'[(m*H + h), r] = 1 iff r decodes to (kh, m, lh) with
    #   h == lh*SH - PH + kh*DH and 0 <= h < H   (row index r = (kh*M + m)*LH + lh)
    r = np.arange(KH * M * LH)
    lh = r % LH
    m = (r // LH) % M
    kh = r // (LH * M)
    oh = lh * SH - PH + kh * DH
    aval = (oh >= 0) & (oh < H)
    at = np.zeros((M * H, KH * M * LH), np.float32)
    at[m[aval] * H + oh[aval], r[aval]] = 1.0

    return (jnp.asarray(at, dtype=jnp.bfloat16),
            jnp.asarray(b, dtype=jnp.bfloat16))


def _fold_kernel(x_ref, b_ref, at_ref, o_ref):
    """out_flat = A' @ (X @ B); single grid step, everything VMEM-resident."""
    x = x_ref[...]
    # (KH*M*LH, KW*LW) @ (KW*LW, W) -> (KH*M*LH, W), f32 accumulation.
    y = jnp.dot(x, b_ref[...].astype(x.dtype),
                preferred_element_type=jnp.float32)
    # (M*H, KH*M*LH) @ (KH*M*LH, W) -> (M*H, W), f32 accumulation.
    o = jnp.dot(at_ref[...].astype(jnp.float32), y,
                preferred_element_type=jnp.float32)
    o_ref[...] = o.astype(o_ref.dtype)


def fold(x, output_size, kernel_size, stride=1, padding=0, dilation=1):
    """torch.nn.functional.fold (col2im) on TPU via a single Pallas kernel."""
    H, W = _pair(output_size)
    KH, KW = _pair(kernel_size)
    SH, SW = _pair(stride)
    PH, PW = _pair(padding)
    DH, DW = _pair(dilation)

    N, CKK, L = x.shape
    assert CKK % (KH * KW) == 0, (CKK, KH, KW)
    C = CKK // (KH * KW)
    LH = (H + 2 * PH - DH * (KH - 1) - 1) // SH + 1
    LW = (W + 2 * PW - DW * (KW - 1) - 1) // SW + 1
    assert LH * LW == L, (LH, LW, L)

    M = N * C
    R = KH * M * LH            # contraction dim of the second matmul
    Q = KW * LW                # contraction dim of the first matmul
    MH = M * H

    at, b = _fold_scatter_mats(M, H, W, KH, KW, SH, SW, PH, PW, DH, DW, LH, LW)

    # (N, C*KH*KW, L) -> (N, C, KH, KW, LH, LW) -> (KH, N, C, LH, KW, LW)
    # -> (KH*M*LH, KW*LW).  Pure layout plumbing on ~100 KB, done by XLA
    # outside the kernel.
    x_full = jnp.transpose(x.reshape(N, C, KH, KW, LH, LW),
                           (2, 0, 1, 4, 3, 5)).reshape(R, Q)

    itemsize = jnp.dtype(x.dtype).itemsize
    cost = pl.CostEstimate(
        flops=2 * R * Q * W + 2 * MH * R * W,
        transcendentals=0,
        bytes_accessed=R * Q * itemsize + (Q * W + MH * R) * 2
                       + MH * W * itemsize,
    )

    vmem = pl.BlockSpec(memory_space=pltpu.MemorySpace.VMEM)
    out_flat = pl.pallas_call(
        _fold_kernel,
        out_shape=jax.ShapeDtypeStruct((MH, W), x.dtype),
        in_specs=[vmem, vmem, vmem],
        out_specs=vmem,
        cost_estimate=cost,
    )(x_full, b, at)

    return out_flat.reshape(N, C, H, W)


@jax.jit
def forward(x, y, z):
    """Forward pass of the PyTorch Model: three independent folds."""
    fx = fold(x, 22, 3)
    fy = fold(y, (17, 18), (2, 4), stride=(2, 1), padding=2, dilation=1)
    fz = fold(z, (5, 11), (1, 3), stride=1, padding=(2, 4), dilation=1)
    return fx, fy, fz


def fold_ref(x, output_size, kernel_size, stride=1, padding=0, dilation=1):
    """Independent numpy reference (loop-based col2im) for validation."""
    H, W = _pair(output_size)
    KH, KW = _pair(kernel_size)
    SH, SW = _pair(stride)
    PH, PW = _pair(padding)
    DH, DW = _pair(dilation)
    N, CKK, L = x.shape
    C = CKK // (KH * KW)
    LH = (H + 2 * PH - DH * (KH - 1) - 1) // SH + 1
    LW = (W + 2 * PW - DW * (KW - 1) - 1) // SW + 1
    xr = np.asarray(x).reshape(N, C, KH, KW, LH, LW)
    out = np.zeros((N, C, H, W), dtype=np.float32)
    for kh in range(KH):
        for kw in range(KW):
            for lh in range(LH):
                oh = lh * SH - PH + kh * DH
                if oh < 0 or oh >= H:
                    continue
                for lw in range(LW):
                    ow = lw * SW - PW + kw * DW
                    if ow < 0 or ow >= W:
                        continue
                    out[:, :, oh, ow] += xr[:, :, kh, kw, lh, lw]
    return out


if __name__ == "__main__":
    key = jax.random.PRNGKey(0)
    k1, k2, k3 = jax.random.split(key, 3)

    N, C = 2, 2
    # Shapes chosen so L matches each fold configuration of the module:
    #   x: out 22x22, k=3, s=1, p=0         -> L = 20*20 = 400, channels = C*9
    #   y: out 17x18, k=(2,4), s=(2,1), p=2 -> L = 10*19 = 190, channels = C*8
    #   z: out 5x11,  k=(1,3), s=1, p=(2,4) -> L = 9*17  = 153, channels = C*3
    x = jax.random.uniform(k1, (N, C * 3 * 3, 400), dtype=jnp.float32)
    y = jax.random.uniform(k2, (N, C * 2 * 4, 190), dtype=jnp.float32)
    z = jax.random.uniform(k3, (N, C * 1 * 3, 153), dtype=jnp.float32)

    fx, fy, fz = forward(x, y, z)
    jax.block_until_ready((fx, fy, fz))

    assert fx.shape == (N, C, 22, 22), fx.shape
    assert fy.shape == (N, C, 17, 18), fy.shape
    assert fz.shape == (N, C, 5, 11), fz.shape

    np.testing.assert_allclose(np.asarray(fx), fold_ref(x, 22, 3),
                               rtol=1e-5, atol=1e-5)
    np.testing.assert_allclose(
        np.asarray(fy),
        fold_ref(y, (17, 18), (2, 4), stride=(2, 1), padding=2, dilation=1),
        rtol=1e-5, atol=1e-5)
    np.testing.assert_allclose(
        np.asarray(fz),
        fold_ref(z, (5, 11), (1, 3), stride=1, padding=(2, 4), dilation=1),
        rtol=1e-5, atol=1e-5)

    print("KERNEL_OK")
</pallas_src>

<mosaic_0001>
module attributes {stable_mosaic.version = 11 : i64} {
  func.func @_fold_kernel(%arg0: memref<240x60xf32, #tpu.memory_space<vmem>>, %arg1: memref<60x22xbf16, #tpu.memory_space<vmem>>, %arg2: memref<88x240xbf16, #tpu.memory_space<vmem>>, %arg3: memref<88x22xf32, #tpu.memory_space<vmem>>) attributes {dimension_semantics = [], scalar_prefetch = 0 : i64, scratch_operands = 0 : i64, tpu.core_type = #tpu.core_type<tc>} {
    %c0 = arith.constant 0 : index
    %c0_0 = arith.constant 0 : index
    %0 = vector.load %arg0[%c0, %c0_0] : memref<240x60xf32, #tpu.memory_space<vmem>>, vector<240x60xf32>
    %c0_1 = arith.constant 0 : index
    %c0_2 = arith.constant 0 : index
    %1 = vector.load %arg1[%c0_1, %c0_2] : memref<60x22xbf16, #tpu.memory_space<vmem>>, vector<60x22xbf16>
    %2 = arith.extf %1 : vector<60x22xbf16> to vector<60x22xf32>
    %cst = arith.constant dense<0.000000e+00> : vector<240x22xf32>
    %3 = tpu.matmul %0, %2, %cst {dimension_numbers = #tpu.dot_dimension_numbers<[1], [0], [0], [1], [0, 0, 1, 1], [], []>} : vector<240x60xf32>, vector<60x22xf32>, vector<240x22xf32> -> vector<240x22xf32>
    %c0_3 = arith.constant 0 : index
    %c0_4 = arith.constant 0 : index
    %4 = vector.load %arg2[%c0_3, %c0_4] : memref<88x240xbf16, #tpu.memory_space<vmem>>, vector<88x240xbf16>
    %5 = arith.extf %4 : vector<88x240xbf16> to vector<88x240xf32>
    %cst_5 = arith.constant dense<0.000000e+00> : vector<88x22xf32>
    %6 = tpu.matmul %5, %3, %cst_5 {dimension_numbers = #tpu.dot_dimension_numbers<[1], [0], [0], [1], [0, 0, 1, 1], [], []>} : vector<88x240xf32>, vector<240x22xf32>, vector<88x22xf32> -> vector<88x22xf32>
    %c0_6 = arith.constant 0 : index
    %c0_7 = arith.constant 0 : index
    %7 = vector.load %arg3[%c0_6, %c0_7] : memref<88x22xf32, #tpu.memory_space<vmem>>, vector<88x22xf32>
    tpu.vector_store %arg3[%c0_6, %c0_7], %6 {strides = array<i32>} : memref<88x22xf32, #tpu.memory_space<vmem>>, vector<88x22xf32>,
    return
  }
}

module attributes {stable_mosaic.version = 11 : i64} {
  func.func @_fold_kernel(%arg0: memref<80x76xf32, #tpu.memory_space<vmem>>, %arg1: memref<76x18xbf16, #tpu.memory_space<vmem>>, %arg2: memref<68x80xbf16, #tpu.memory_space<vmem>>, %arg3: memref<68x18xf32, #tpu.memory_space<vmem>>) attributes {dimension_semantics = [], scalar_prefetch = 0 : i64, scratch_operands = 0 : i64, tpu.core_type = #tpu.core_type<tc>} {
    %c0 = arith.constant 0 : index
    %c0_0 = arith.constant 0 : index
    %0 = vector.load %arg0[%c0, %c0_0] : memref<80x76xf32, #tpu.memory_space<vmem>>, vector<80x76xf32>
    %c0_1 = arith.constant 0 : index
    %c0_2 = arith.constant 0 : index
    %1 = vector.load %arg1[%c0_1, %c0_2] : memref<76x18xbf16, #tpu.memory_space<vmem>>, vector<76x18xbf16>
    %2 = arith.extf %1 : vector<76x18xbf16> to vector<76x18xf32>
    %cst = arith.constant dense<0.000000e+00> : vector<80x18xf32>
    %3 = tpu.matmul %0, %2, %cst {dimension_numbers = #tpu.dot_dimension_numbers<[1], [0], [0], [1], [0, 0, 1, 1], [], []>} : vector<80x76xf32>, vector<76x18xf32>, vector<80x18xf32> -> vector<80x18xf32>
    %c0_3 = arith.constant 0 : index
    %c0_4 = arith.constant 0 : index
    %4 = vector.load %arg2[%c0_3, %c0_4] : memref<68x80xbf16, #tpu.memory_space<vmem>>, vector<68x80xbf16>
    %5 = arith.extf %4 : vector<68x80xbf16> to vector<68x80xf32>
    %cst_5 = arith.constant dense<0.000000e+00> : vector<68x18xf32>
    %6 = tpu.matmul %5, %3, %cst_5 {dimension_numbers = #tpu.dot_dimension_numbers<[1], [0], [0], [1], [0, 0, 1, 1], [], []>} : vector<68x80xf32>, vector<80x18xf32>, vector<68x18xf32> -> vector<68x18xf32>
    %c0_6 = arith.constant 0 : index
    %c0_7 = arith.constant 0 : index
    %7 = vector.load %arg3[%c0_6, %c0_7] : memref<68x18xf32, #tpu.memory_space<vmem>>, vector<68x18xf32>
    tpu.vector_store %arg3[%c0_6, %c0_7], %6 {strides = array<i32>} : memref<68x18xf32, #tpu.memory_space<vmem>>, vector<68x18xf32>,
    return
  }
}

module attributes {stable_mosaic.version = 11 : i64} {
  func.func @_fold_kernel(%arg0: memref<36x51xf32, #tpu.memory_space<vmem>>, %arg1: memref<51x11xbf16, #tpu.memory_space<vmem>>, %arg2: memref<20x36xbf16, #tpu.memory_space<vmem>>, %arg3: memref<20x11xf32, #tpu.memory_space<vmem>>) attributes {dimension_semantics = [], scalar_prefetch = 0 : i64, scratch_operands = 0 : i64, tpu.core_type = #tpu.core_type<tc>} {
    %c0 = arith.constant 0 : index
    %c0_0 = arith.constant 0 : index
    %0 = vector.load %arg0[%c0, %c0_0] : memref<36x51xf32, #tpu.memory_space<vmem>>, vector<36x51xf32>
    %c0_1 = arith.constant 0 : index
    %c0_2 = arith.constant 0 : index
    %1 = vector.load %arg1[%c0_1, %c0_2] : memref<51x11xbf16, #tpu.memory_space<vmem>>, vector<51x11xbf16>
    %2 = arith.extf %1 : vector<51x11xbf16> to vector<51x11xf32>
    %cst = arith.constant dense<0.000000e+00> : vector<36x11xf32>
    %3 = tpu.matmul %0, %2, %cst {dimension_numbers = #tpu.dot_dimension_numbers<[1], [0], [0], [1], [0, 0, 1, 1], [], []>} : vector<36x51xf32>, vector<51x11xf32>, vector<36x11xf32> -> vector<36x11xf32>
    %c0_3 = arith.constant 0 : index
    %c0_4 = arith.constant 0 : index
    %4 = vector.load %arg2[%c0_3, %c0_4] : memref<20x36xbf16, #tpu.memory_space<vmem>>, vector<20x36xbf16>
    %5 = arith.extf %4 : vector<20x36xbf16> to vector<20x36xf32>
    %cst_5 = arith.constant dense<0.000000e+00> : vector<20x11xf32>
    %6 = tpu.matmul %5, %3, %cst_5 {dimension_numbers = #tpu.dot_dimension_numbers<[1], [0], [0], [1], [0, 0, 1, 1], [], []>} : vector<20x36xf32>, vector<36x11xf32>, vector<20x11xf32> -> vector<20x11xf32>
    %c0_6 = arith.constant 0 : index
    %c0_7 = arith.constant 0 : index
    %7 = vector.load %arg3[%c0_6, %c0_7] : memref<20x11xf32, #tpu.memory_space<vmem>>, vector<20x11xf32>
    tpu.vector_store %arg3[%c0_6, %c0_7], %6 {strides = array<i32>} : memref<20x11xf32, #tpu.memory_space<vmem>>, vector<20x11xf32>,
    return
  }
}

</mosaic_0001>

<bundles_post_ra>
// kernel: forward.3
= control target key start
LH: loop header
LB: loop body
LE: loop exit
PB: predicated region body
PF: predicated region fallthrough
CT: control target
= control target key end

     0   :  { %vm60_vm0 = vcmask 490496   ;;  %vm151_vm1 = vcmask 1043456   ;;  %vm826_vm2 = vmmov 1   ;;  %v827_v34 = vmov 0.0|0.0   ;;  %s1106_s1 = inlined_call_operand.vmem [shape: bf16[60,22], index: 1, kind: input, shape index: {}]   ;;  %s1107_s0 = inlined_call_operand.vmem [shape: f32[240,60], index: 0, kind: input, shape index: {}]   ;;  %s1108_s2 = inlined_call_operand.vmem [shape: bf16[88,240], index: 2, kind: input, shape index: {}]   ;;  %s1109_s3 = inlined_call_operand.vmem [shape: f32[88,22], index: 3, kind: output, shape index: {}]  }
   0x1   :  { %v616_v0 = vld [vmem:[%s1106_s1] sm:$0xff]   ;;  %v627_v1 = vld [vmem:[%s1106_s1 + $0x8] sm:$0xff]   ;;  %v628_v3 = vld [vmem:[%s1106_s1 + $0x10] sm:$0xff]   ;;  %791 = vmatprep.subr.bf16.mxu1 %v827_v34  ;;  %vm403_vm4 = vcmask 916480   ;;  %vm557_vm5 = vcmask 179200  }
   0x2   :  { %729 = vmatprep.subr.bf16.mxu0 %v616_v0  ;;  %v14_v2 = vld [vmem:[%s1107_s0] sm:$0xff]  ;;  %v825_v4 = vld [vmem:[%s1106_s1 + $0x18] sm:$0x3f]   ;;  %vm741_vm3 = vmpackc.low %vm151_vm1, %vm826_vm2 }
   0x3   :  { %731 = vmatpush3.bf16.msra.mxu0 %v616_v0  ;;  %683 = vmatprep.mubr.msk.f32.mxu0 %vm60_vm0, %v14_v2  ;;  %v15_v5 = vld [vmem:[%s1107_s0 + $0x8] sm:$0xff]  ;;  %v16_v6 = vld [vmem:[%s1107_s0 + $0x10] sm:$0xff]  ;;  %v17_v7 = vld [vmem:[%s1107_s0 + $0x18] sm:$0xff] }
   0x4   :  { %733 = vmatprep.subr.bf16.mxu0 %v627_v1  ;;  %v18_v8 = vld [vmem:[%s1107_s0 + $0x20] sm:$0xff]  ;;  %v19_v9 = vld [vmem:[%s1107_s0 + $0x28] sm:$0xff]  ;;  %v20_v10 = vld [vmem:[%s1107_s0 + $0x30] sm:$0xff] }
   0x5   :  { %v21_v11 = vld [vmem:[%s1107_s0 + $0x38] sm:$0xff]  ;;  %v22_v12 = vld [vmem:[%s1107_s0 + $0x40] sm:$0xff]  ;;  %v23_v13 = vld [vmem:[%s1107_s0 + $0x48] sm:$0xff] }
   0x6   :  { %v24_v14 = vld [vmem:[%s1107_s0 + $0x50] sm:$0xff]  ;;  %v25_v15 = vld [vmem:[%s1107_s0 + $0x58] sm:$0xff]  ;;  %v26_v16 = vld [vmem:[%s1107_s0 + $0x60] sm:$0xff] }
   0x7   :  { %735 = vmatpush3.bf16.msra.mxu0 %v627_v1  ;;  %v27_v17 = vld [vmem:[%s1107_s0 + $0x68] sm:$0xff]  ;;  %v28_v18 = vld [vmem:[%s1107_s0 + $0x70] sm:$0xff]  ;;  %v29_v19 = vld [vmem:[%s1107_s0 + $0x78] sm:$0xff] }
   0x8   :  { %737 = vmatprep.subr.bf16.mxu0 %v628_v3  ;;  %v30_v20 = vld [vmem:[%s1107_s0 + $0x80] sm:$0xff]  ;;  %v31_v21 = vld [vmem:[%s1107_s0 + $0x88] sm:$0xff]  ;;  %v32_v22 = vld [vmem:[%s1107_s0 + $0x90] sm:$0xff] }
   0x9   :  { %v33_v23 = vld [vmem:[%s1107_s0 + $0x98] sm:$0xff]  ;;  %v34_v24 = vld [vmem:[%s1107_s0 + $0xa0] sm:$0xff]  ;;  %v35_v25 = vld [vmem:[%s1107_s0 + $0xa8] sm:$0xff] }
   0xa   :  { %v36_v26 = vld [vmem:[%s1107_s0 + $0xb0] sm:$0xff]  ;;  %v37_v27 = vld [vmem:[%s1107_s0 + $0xb8] sm:$0xff]  ;;  %v38_v28 = vld [vmem:[%s1107_s0 + $0xc0] sm:$0xff] }
   0xb   :  { %739 = vmatpush3.bf16.msra.mxu0 %v628_v3  ;;  %v39_v29 = vld [vmem:[%s1107_s0 + $0xc8] sm:$0xff]  ;;  %v40_v30 = vld [vmem:[%s1107_s0 + $0xd0] sm:$0xff]  ;;  %v41_v31 = vld [vmem:[%s1107_s0 + $0xd8] sm:$0xff] }
   0xc   :  { %742 = vmatprep.subr.msk.bf16.mxu0 %vm741_vm3, %v825_v4  ;;  %v42_v32 = vld [vmem:[%s1107_s0 + $0xe0] sm:$0xff]  ;;  %v43_v33 = vld [vmem:[%s1107_s0 + $0xe8] sm:$0xff]  ;;  %v985_v35 = vld [vmem:[%s1108_s2 + $0x18] sm:$0xff] }
   0xd   :  { %v388_v36 = vunpack.c.h.bf16 %v985_v35  ;;  %v992_v37 = vld [vmem:[%s1108_s2] sm:$0xff] }
   0xe   :  { %v382_v38 = vunpack.c.h.bf16 %v992_v37 }
   0xf   :  { %745 = vmatpush3.bf16.msk.msra.mxu0 %vm741_vm3, %v825_v4  ;;  %607 = vmatprep.mubr.msk.f32.mxu1 %vm403_vm4, %v388_v36  ;;  %v377_v36 = vld [vmem:[%s1108_s2 + $0x38] sm:$0xff] }
  0x10   :  { %746 = vmatprep.subr.bf16.mxu0 %v827_v34 }
  0x12   :  { %684 = vmatmul.mubr.msk.f32.vlgmr.msra.gmra.mrb[0].mxu0 %vm60_vm0, %v15_v5 }
  0x13   :  { %686 = vmatprep.mubr.msk.f32.mxu0 %vm60_vm0, %v16_v6 }
  0x16   :  { %687 = vmatmul.mubr.msk.f32.gmra.mrb[2].mxu0 %vm60_vm0, %v17_v7 }
  0x17   :  { %689 = vmatprep.mubr.msk.f32.mxu0 %vm60_vm0, %v18_v8 }
  0x1a   :  { %690 = vmatmul.mubr.msk.f32.gmra.mrb[4].mxu0 %vm60_vm0, %v19_v9 }
  0x1b   :  { %692 = vmatprep.mubr.msk.f32.mxu0 %vm60_vm0, %v20_v10 }
  0x1e   :  { %693 = vmatmul.mubr.msk.f32.gmra.mrb[6].mxu0 %vm60_vm0, %v21_v11 }
  0x1f   :  { %695 = vmatprep.mubr.msk.f32.mxu0 %vm60_vm0, %v22_v12 }
  0x22   :  { %696 = vmatmul.mubr.msk.f32.gmra.mrb[8].mxu0 %vm60_vm0, %v23_v13 }
  0x23   :  { %698 = vmatprep.mubr.msk.f32.mxu0 %vm60_vm0, %v24_v14 }
  0x26   :  { %699 = vmatmul.mubr.msk.f32.gmra.mrb[10].mxu0 %vm60_vm0, %v25_v15 }
  0x27   :  { %701 = vmatprep.mubr.msk.f32.mxu0 %vm60_vm0, %v26_v16 }
  0x2a   :  { %702 = vmatmul.mubr.msk.f32.gmra.mrb[12].mxu0 %vm60_vm0, %v27_v17 }
  0x2b   :  { %704 = vmatprep.mubr.msk.f32.mxu0 %vm60_vm0, %v28_v18 }
  0x2e   :  { %705 = vmatmul.mubr.msk.f32.gmra.mrb[14].mxu0 %vm60_vm0, %v29_v19  ;;  %v374_v19 = vld [vmem:[%s1108_s2 + $0x20] sm:$0xff] }
  0x2f   :  { %707 = vmatprep.mubr.msk.f32.mxu0 %vm60_vm0, %v30_v20  ;;  %v371_v20 = vld [vmem:[%s1108_s2 + $0x8] sm:$0xff] }
  0x32   :  { %708 = vmatmul.mubr.msk.f32.gmra.mrb[16].mxu0 %vm60_vm0, %v31_v21 }
  0x33   :  { %710 = vmatprep.mubr.msk.f32.mxu0 %vm60_vm0, %v32_v22  ;;  %v387_v22 = vunpack.c.l.bf16 %v985_v35 }
  0x36   :  { %711 = vmatmul.mubr.msk.f32.gmra.mrb[18].mxu0 %vm60_vm0, %v33_v23  ;;  %v381_v23 = vunpack.c.l.bf16 %v992_v37 }
  0x37   :  { %713 = vmatprep.mubr.msk.f32.mxu0 %vm60_vm0, %v34_v24  ;;  %v390_v24 = vunpack.c.h.bf16 %v374_v19 }
  0x3a   :  { %714 = vmatmul.mubr.msk.f32.gmra.mrb[20].mxu0 %vm60_vm0, %v35_v25  ;;  %v384_v25 = vunpack.c.h.bf16 %v371_v20 }
  0x3b   :  { %716 = vmatprep.mubr.msk.f32.mxu0 %vm60_vm0, %v36_v26  ;;  %v375_v26 = vld [vmem:[%s1108_s2 + $0x28] sm:$0xff] }
  0x3e   :  { %717 = vmatmul.mubr.msk.f32.gmra.mrb[22].mxu0 %vm60_vm0, %v37_v27  ;;  %v372_v27 = vld [vmem:[%s1108_s2 + $0x10] sm:$0xff] }
  0x3f   :  { %719 = vmatprep.mubr.msk.f32.mxu0 %vm60_vm0, %v38_v28  ;;  %v389_v28 = vunpack.c.l.bf16 %v374_v19 }
  0x42   :  { %720 = vmatmul.mubr.msk.f32.gmra.mrb[24].mxu0 %vm60_vm0, %v39_v29  ;;  %v383_v29 = vunpack.c.l.bf16 %v371_v20 }
  0x43   :  { %722 = vmatprep.mubr.msk.f32.mxu0 %vm60_vm0, %v40_v30  ;;  %v392_v30 = vunpack.c.h.bf16 %v375_v26 }
  0x46   :  { %723 = vmatmul.mubr.msk.f32.gmra.mrb[26].mxu0 %vm60_vm0, %v41_v31  ;;  %v386_v31 = vunpack.c.h.bf16 %v372_v27 }
  0x47   :  { %725 = vmatprep.mubr.msk.f32.mxu0 %vm60_vm0, %v42_v32  ;;  %v376_v32 = vld [vmem:[%s1108_s2 + $0x30] sm:$0xff] }
  0x48   :  { %v394_v35 = vunpack.c.h.bf16 %v376_v32  ;;  %v393_v37 = vunpack.c.l.bf16 %v376_v32 }
  0x4a   :  { %726 = vmatmul.mubr.msk.f32.gmra.mrb[28].mxu0 %vm60_vm0, %v43_v33  ;;  %v391_v33 = vunpack.c.l.bf16 %v375_v26 }
  0x4b   :  { %604 = vmatprep.mubr.msk.f32.mxu0 %vm403_vm4, %v382_v38  ;;  %v396_v38 = vunpack.c.h.bf16 %v377_v36 }
  0xe5   :  { %v685_v39 = vpop.f32.mrb[0].mxu0 }
  0xe6   :  { %v221_v40 = vpop.f32.mrb[1].mxu0 }
  0xe7   :  { %v747_v41 = vpack.c.bf16 %v685_v39, %v221_v40  ;;  %v378_v39 = vld [vmem:[%s1108_s2 + $0x40] sm:$0xff]  ;;  %v395_v40 = vunpack.c.l.bf16 %v377_v36 }
  0xe9   :  { %v688_v42 = vpop.f32.mrb[2].mxu0  ;;  %748 = vmatpush1.bf16.msra.mxu0 %v747_v41  ;;  %806 = vmatpush1.bf16.msra.mxu1 %v747_v41  ;;  %v398_v41 = vunpack.c.h.bf16 %v378_v39 }
  0xea   :  { %v231_v43 = vpop.f32.mrb[3].mxu0  ;;  %749 = vmatprep.subr.bf16.mxu0 %v827_v34  ;;  %792 = vmatprep.subr.bf16.mxu1 %v827_v34 }
  0xeb   :  { %v750_v44 = vpack.c.bf16 %v688_v42, %v231_v43  ;;  %v379_v42 = vld [vmem:[%s1108_s2 + $0x48] sm:$0xff]  ;;  %v397_v43 = vunpack.c.l.bf16 %v378_v39 }
  0xed   :  { %v691_v45 = vpop.f32.mrb[4].mxu0  ;;  %751 = vmatpush1.bf16.msra.mxu0 %v750_v44  ;;  %807 = vmatpush1.bf16.msra.mxu1 %v750_v44  ;;  %v400_v44 = vunpack.c.h.bf16 %v379_v42 }
  0xee   :  { %v241_v46 = vpop.f32.mrb[5].mxu0  ;;  %752 = vmatprep.subr.bf16.mxu0 %v827_v34  ;;  %793 = vmatprep.subr.bf16.mxu1 %v827_v34 }
  0xef   :  { %v753_v47 = vpack.c.bf16 %v691_v45, %v241_v46  ;;  %v380_v45 = vld [vmem:[%s1108_s2 + $0x50] sm:$0xff]  ;;  %v399_v46 = vunpack.c.l.bf16 %v379_v42 }
  0xf1   :  { %v694_v48 = vpop.f32.mrb[6].mxu0  ;;  %754 = vmatpush1.bf16.msra.mxu0 %v753_v47  ;;  %808 = vmatpush1.bf16.msra.mxu1 %v753_v47  ;;  %v402_v47 = vunpack.c.h.bf16 %v380_v45 }
  0xf2   :  { %v251_v49 = vpop.f32.mrb[7].mxu0  ;;  %755 = vmatprep.subr.bf16.mxu0 %v827_v34  ;;  %794 = vmatprep.subr.bf16.mxu1 %v827_v34 }
  0xf3   :  { %v756_v50 = vpack.c.bf16 %v694_v48, %v251_v49  ;;  %v401_v48 = vunpack.c.l.bf16 %v380_v45 }
  0xf5   :  { %v697_v51 = vpop.f32.mrb[8].mxu0  ;;  %757 = vmatpush1.bf16.msra.mxu0 %v756_v50  ;;  %809 = vmatpush1.bf16.msra.mxu1 %v756_v50 }
  0xf6   :  { %v261_v52 = vpop.f32.mrb[9].mxu0  ;;  %758 = vmatprep.subr.bf16.mxu0 %v827_v34  ;;  %795 = vmatprep.subr.bf16.mxu1 %v827_v34 }
  0xf7   :  { %v759_v53 = vpack.c.bf16 %v697_v51, %v261_v52 }
  0xf9   :  { %v700_v54 = vpop.f32.mrb[10].mxu0  ;;  %760 = vmatpush1.bf16.msra.mxu0 %v759_v53  ;;  %810 = vmatpush1.bf16.msra.mxu1 %v759_v53 }
  0xfa   :  { %v271_v55 = vpop.f32.mrb[11].mxu0  ;;  %761 = vmatprep.subr.bf16.mxu0 %v827_v34  ;;  %796 = vmatprep.subr.bf16.mxu1 %v827_v34 }
  0xfb   :  { %v762_v56 = vpack.c.bf16 %v700_v54, %v271_v55 }
  0xfd   :  { %v703_v57 = vpop.f32.mrb[12].mxu0  ;;  %763 = vmatpush1.bf16.msra.mxu0 %v762_v56  ;;  %811 = vmatpush1.bf16.msra.mxu1 %v762_v56 }
  0xfe   :  { %v281_v58 = vpop.f32.mrb[13].mxu0  ;;  %764 = vmatprep.subr.bf16.mxu0 %v827_v34  ;;  %797 = vmatprep.subr.bf16.mxu1 %v827_v34 }
  0xff   :  { %v765_v59 = vpack.c.bf16 %v703_v57, %v281_v58 }
 0x101   :  { %v706_v60 = vpop.f32.mrb[14].mxu0  ;;  %766 = vmatpush1.bf16.msra.mxu0 %v765_v59  ;;  %812 = vmatpush1.bf16.msra.mxu1 %v765_v59 }
 0x102   :  { %v291_v61 = vpop.f32.mrb[15].mxu0  ;;  %767 = vmatprep.subr.bf16.mxu0 %v827_v34  ;;  %798 = vmatprep.subr.bf16.mxu1 %v827_v34 }
 0x103   :  { %v768_v62 = vpack.c.bf16 %v706_v60, %v291_v61 }
 0x105   :  { %v709_v63 = vpop.f32.mrb[16].mxu0  ;;  %769 = vmatpush1.bf16.msra.mxu0 %v768_v62  ;;  %813 = vmatpush1.bf16.msra.mxu1 %v768_v62 }
 0x106   :  { %v301_v0 = vpop.f32.mrb[17].mxu0  ;;  %770 = vmatprep.subr.bf16.mxu0 %v827_v34  ;;  %799 = vmatprep.subr.bf16.mxu1 %v827_v34 }
 0x107   :  { %v771_v1 = vpack.c.bf16 %v709_v63, %v301_v0 }
 0x109   :  { %v712_v2 = vpop.f32.mrb[18].mxu0  ;;  %772 = vmatpush1.bf16.msra.mxu0 %v771_v1  ;;  %814 = vmatpush1.bf16.msra.mxu1 %v771_v1 }
 0x10a   :  { %v311_v3 = vpop.f32.mrb[19].mxu0  ;;  %773 = vmatprep.subr.bf16.mxu0 %v827_v34  ;;  %800 = vmatprep.subr.bf16.mxu1 %v827_v34 }
 0x10b   :  { %v774_v4 = vpack.c.bf16 %v712_v2, %v311_v3 }
 0x10d   :  { %v715_v5 = vpop.f32.mrb[20].mxu0  ;;  %775 = vmatpush1.bf16.msra.mxu0 %v774_v4  ;;  %815 = vmatpush1.bf16.msra.mxu1 %v774_v4 }
 0x10e   :  { %v321_v6 = vpop.f32.mrb[21].mxu0  ;;  %776 = vmatprep.subr.bf16.mxu0 %v827_v34  ;;  %801 = vmatprep.subr.bf16.mxu1 %v827_v34 }
 0x10f   :  { %v777_v7 = vpack.c.bf16 %v715_v5, %v321_v6 }
 0x111   :  { %v718_v8 = vpop.f32.mrb[22].mxu0  ;;  %778 = vmatpush1.bf16.msra.mxu0 %v777_v7  ;;  %816 = vmatpush1.bf16.msra.mxu1 %v777_v7 }
 0x112   :  { %v331_v9 = vpop.f32.mrb[23].mxu0  ;;  %779 = vmatprep.subr.bf16.mxu0 %v827_v34  ;;  %802 = vmatprep.subr.bf16.mxu1 %v827_v34 }
 0x113   :  { %v780_v10 = vpack.c.bf16 %v718_v8, %v331_v9 }
 0x115   :  { %v721_v11 = vpop.f32.mrb[24].mxu0  ;;  %781 = vmatpush1.bf16.msra.mxu0 %v780_v10  ;;  %817 = vmatpush1.bf16.msra.mxu1 %v780_v10 }
 0x116   :  { %v341_v12 = vpop.f32.mrb[25].mxu0  ;;  %782 = vmatprep.subr.bf16.mxu0 %v827_v34  ;;  %803 = vmatprep.subr.bf16.mxu1 %v827_v34 }
 0x117   :  { %v783_v13 = vpack.c.bf16 %v721_v11, %v341_v12 }
 0x119   :  { %v724_v14 = vpop.f32.mrb[26].mxu0  ;;  %784 = vmatpush1.bf16.msra.mxu0 %v783_v13  ;;  %818 = vmatpush1.bf16.msra.mxu1 %v783_v13 }
 0x11a   :  { %v351_v15 = vpop.f32.mrb[27].mxu0  ;;  %785 = vmatprep.subr.bf16.mxu0 %v827_v34  ;;  %804 = vmatprep.subr.bf16.mxu1 %v827_v34 }
 0x11b   :  { %v786_v16 = vpack.c.bf16 %v724_v14, %v351_v15 }
 0x11d   :  { %v727_v17 = vpop.f32.mrb[28].mxu0  ;;  %787 = vmatpush1.bf16.msra.mxu0 %v786_v16  ;;  %819 = vmatpush1.bf16.msra.mxu1 %v786_v16 }
 0x11e   :  { %v361_v18 = vpop.f32.mrb[29].mxu0  ;;  %788 = vmatprep.subr.bf16.mxu0 %v827_v34  ;;  %805 = vmatprep.subr.bf16.mxu1 %v827_v34  ;;  %v385_v34 = vunpack.c.l.bf16 %v372_v27 }
 0x11f   :  { %v789_v21 = vpack.c.bf16 %v727_v17, %v361_v18 }
 0x121   :  { %790 = vmatpush1.bf16.msra.mxu0 %v789_v21  ;;  %820 = vmatpush1.bf16.msra.mxu1 %v789_v21 }
 0x124   :  { %517 = vmatmul.mubr.f32.vlgmr.msra.gmra.mrb[0].mxu1 %v387_v22  ;;  %502 = vmatmul.mubr.f32.vlgmr.msra.gmra.mrb[30].mxu0 %v381_v23 }
 0x125   :  { %608 = vmatprep.mubr.msk.f32.mxu1 %vm403_vm4, %v390_v24  ;;  %605 = vmatprep.mubr.msk.f32.mxu0 %vm403_vm4, %v384_v25 }
 0x128   :  { %522 = vmatmul.mubr.f32.gmra.mrb[2].mxu1 %v389_v28  ;;  %507 = vmatmul.mubr.f32.gmra.mrb[32].mxu0 %v383_v29 }
 0x129   :  { %609 = vmatprep.mubr.msk.f32.mxu1 %vm403_vm4, %v392_v30  ;;  %606 = vmatprep.mubr.msk.f32.mxu0 %vm403_vm4, %v386_v31 }
 0x12c   :  { %527 = vmatmul.mubr.f32.gmra.mrb[4].mxu1 %v391_v33  ;;  %512 = vmatmul.mubr.f32.gmra.mrb[34].mxu0 %v385_v34 }
 0x12d   :  { %610 = vmatprep.mubr.msk.f32.mxu1 %vm403_vm4, %v394_v35 }
 0x130   :  { %532 = vmatmul.mubr.f32.gmra.mrb[6].mxu1 %v393_v37 }
 0x131   :  { %611 = vmatprep.mubr.msk.f32.mxu1 %vm403_vm4, %v396_v38 }
 0x134   :  { %537 = vmatmul.mubr.f32.gmra.mrb[8].mxu1 %v395_v40 }
 0x135   :  { %612 = vmatprep.mubr.msk.f32.mxu1 %vm403_vm4, %v398_v41 }
 0x138   :  { %542 = vmatmul.mubr.f32.gmra.mrb[10].mxu1 %v397_v43 }
 0x139   :  { %613 = vmatprep.mubr.msk.f32.mxu1 %vm403_vm4, %v400_v44 }
 0x13c   :  { %547 = vmatmul.mubr.f32.gmra.mrb[12].mxu1 %v399_v46 }
 0x13d   :  { %614 = vmatprep.mubr.msk.f32.mxu1 %vm403_vm4, %v402_v47 }
 0x140   :  { %552 = vmatmul.mubr.f32.gmra.mrb[14].mxu1 %v401_v48 }
 0x1f7   :  { %v518_v49 = vpop.f32.mrb[0].mxu1  ;;  %v503_v50 = vpop.f32.mrb[30].mxu0 }
 0x1f8   :  { %561 = vst.msk [vmem:[%s1109_s3 + $0x18] sm:$0xff] %vm557_vm5, %v518_v49  ;;  %v520_v51 = vpop.f32.mrb[1].mxu1  ;;  %558 = vst.msk [vmem:[%s1109_s3] sm:$0xff] %vm557_vm5, %v503_v50  ;;  %v505_v52 = vpop.f32.mrb[31].mxu0 }
 0x1fb   :  { %v523_v53 = vpop.f32.mrb[2].mxu1  ;;  %v508_v54 = vpop.f32.mrb[32].mxu0 }
 0x1fc   :  { %562 = vst.msk [vmem:[%s1109_s3 + $0x20] sm:$0xff] %vm557_vm5, %v523_v53  ;;  %v525_v55 = vpop.f32.mrb[3].mxu1  ;;  %559 = vst.msk [vmem:[%s1109_s3 + $0x8] sm:$0xff] %vm557_vm5, %v508_v54  ;;  %v510_v56 = vpop.f32.mrb[33].mxu0 }
 0x1ff   :  { %v528_v57 = vpop.f32.mrb[4].mxu1  ;;  %v513_v58 = vpop.f32.mrb[34].mxu0 }
 0x200   :  { %563 = vst.msk [vmem:[%s1109_s3 + $0x28] sm:$0xff] %vm557_vm5, %v528_v57  ;;  %v530_v59 = vpop.f32.mrb[5].mxu1  ;;  %560 = vst.msk [vmem:[%s1109_s3 + $0x10] sm:$0xff] %vm557_vm5, %v513_v58  ;;  %v515_v60 = vpop.f32.mrb[35].mxu0 }
 0x203   :  { %v533_v61 = vpop.f32.mrb[6].mxu1 }
 0x204   :  { %564 = vst.msk [vmem:[%s1109_s3 + $0x30] sm:$0xff] %vm557_vm5, %v533_v61  ;;  %v535_v62 = vpop.f32.mrb[7].mxu1 }
 0x207   :  { %v538_v63 = vpop.f32.mrb[8].mxu1 }
 0x208   :  { %565 = vst.msk [vmem:[%s1109_s3 + $0x38] sm:$0xff] %vm557_vm5, %v538_v63  ;;  %v540_v0 = vpop.f32.mrb[9].mxu1 }
 0x20b   :  { %v543_v1 = vpop.f32.mrb[10].mxu1 }
 0x20c   :  { %566 = vst.msk [vmem:[%s1109_s3 + $0x40] sm:$0xff] %vm557_vm5, %v543_v1  ;;  %v545_v2 = vpop.f32.mrb[11].mxu1 }
 0x20f   :  { %v548_v3 = vpop.f32.mrb[12].mxu1 }
 0x210   :  { %567 = vst.msk [vmem:[%s1109_s3 + $0x48] sm:$0xff] %vm557_vm5, %v548_v3  ;;  %v550_v4 = vpop.f32.mrb[13].mxu1 }
 0x213   :  { %v553_v5 = vpop.f32.mrb[14].mxu1 }
 0x214   :  { %568 = vst.msk [vmem:[%s1109_s3 + $0x50] sm:$0xff] %vm557_vm5, %v553_v5  ;;  %v555_v6 = vpop.f32.mrb[15].mxu1 }

// kernel: forward.4
= control target key start
LH: loop header
LB: loop body
LE: loop exit
PB: predicated region body
PF: predicated region fallthrough
CT: control target
= control target key end

     0   :  { %vm44_vm0 = vcmask 621568   ;;  %vm75_vm1 = vcmask 1043456   ;;  %vm598_vm2 = vmmov 1   ;;  %v599_v15 = vmov 0.0|0.0   ;;  %s754_s1 = inlined_call_operand.vmem [shape: bf16[76,18], index: 1, kind: input, shape index: {}]   ;;  %s755_s0 = inlined_call_operand.vmem [shape: f32[80,76], index: 0, kind: input, shape index: {}]   ;;  %s756_s2 = inlined_call_operand.vmem [shape: bf16[68,80], index: 2, kind: input, shape index: {}]   ;;  %s757_s3 = inlined_call_operand.vmem [shape: f32[68,18], index: 3, kind: output, shape index: {}]  }
   0x1   :  { %v386_v0 = vld [vmem:[%s754_s1] sm:$0xff]   ;;  %v417_v1 = vld [vmem:[%s754_s1 + $0x8] sm:$0xff]   ;;  %v418_v3 = vld [vmem:[%s754_s1 + $0x10] sm:$0xff]   ;;  %581 = vmatprep.subr.bf16.mxu1 %v599_v15  ;;  %vm600_vm4 = vmmov 0   ;;  %v601_v16 = vmov 0.0   ;;  %vm212_vm5 = vcmask 654336  }
   0x2   :  { %545 = vmatprep.subr.bf16.mxu0 %v386_v0  ;;  %v14_v2 = vld [vmem:[%s755_s0] sm:$0xff]  ;;  %v419_v4 = vld [vmem:[%s754_s1 + $0x18] sm:$0xff]   ;;  %vm561_vm3 = vmpackc.low %vm75_vm1, %vm598_vm2  ;;  %523 = vmatprep.mubr.msk.f32.mxu1 %vm600_vm4, %v601_v16  ;;  %vm350_vm6 = vcmask 146432   ;;  %vm359_vm7 = vcmask 142336  }
   0x3   :  { %547 = vmatpush3.bf16.msra.mxu0 %v386_v0  ;;  %482 = vmatprep.mubr.msk.f32.mxu0 %vm44_vm0, %v14_v2  ;;  %v597_v5 = vld [vmem:[%s754_s1 + $0x20] sm:$0x3f]   ;;  %v15_v6 = vld [vmem:[%s755_s0 + $0x8] sm:$0xff]  ;;  %v16_v7 = vld [vmem:[%s755_s0 + $0x10] sm:$0xff] }
   0x4   :  { %549 = vmatprep.subr.bf16.mxu0 %v417_v1  ;;  %v17_v8 = vld [vmem:[%s755_s0 + $0x18] sm:$0xff]  ;;  %v18_v9 = vld [vmem:[%s755_s0 + $0x20] sm:$0xff]  ;;  %v19_v10 = vld [vmem:[%s755_s0 + $0x28] sm:$0xff] }
   0x5   :  { %v20_v11 = vld [vmem:[%s755_s0 + $0x30] sm:$0xff]  ;;  %v21_v12 = vld [vmem:[%s755_s0 + $0x38] sm:$0xff]  ;;  %v22_v13 = vld [vmem:[%s755_s0 + $0x40] sm:$0xff] }
   0x6   :  { %v23_v14 = vld [vmem:[%s755_s0 + $0x48] sm:$0xff]  ;;  %v402_v31 = vld [vmem:[%s756_s2] sm:$0xff]   ;;  %v421_v38 = vld [vmem:[%s756_s2 + $0x10] sm:$0xff]  }
   0x7   :  { %551 = vmatpush3.bf16.msra.mxu0 %v417_v1  ;;  %v420_v30 = vld [vmem:[%s756_s2 + $0x8] sm:$0xff]   ;;  %v403_v35 = vunpack.c.l.bf16 %v402_v31  ;;  %v404_v37 = vunpack.c.h.bf16 %v402_v31  ;;  %v411_v39 = vunpack.c.l.bf16 %v421_v38  ;;  %v412_v40 = vunpack.c.h.bf16 %v421_v38  ;;  %v422_v41 = vld [vmem:[%s756_s2 + $0x18] sm:$0xff]   ;;  %v202_v44 = vld [vmem:[%s756_s2 + $0x20] sm:$0x3] }
   0x8   :  { %553 = vmatprep.subr.bf16.mxu0 %v418_v3  ;;  %v407_v34 = vunpack.c.l.bf16 %v420_v30  ;;  %v408_v36 = vunpack.c.h.bf16 %v420_v30  ;;  %v415_v42 = vunpack.c.l.bf16 %v422_v41  ;;  %v416_v43 = vunpack.c.h.bf16 %v422_v41 }
   0x9   :  { %v211_v45 = vunpack.c.l.bf16 %v202_v44 }
   0xb   :  { %555 = vmatpush3.bf16.msra.mxu0 %v418_v3 }
   0xc   :  { %557 = vmatprep.subr.bf16.mxu0 %v419_v4 }
   0xf   :  { %559 = vmatpush3.bf16.msra.mxu0 %v419_v4 }
  0x10   :  { %562 = vmatprep.subr.msk.bf16.mxu0 %vm561_vm3, %v597_v5 }
  0x13   :  { %565 = vmatpush3.bf16.msk.msra.mxu0 %vm561_vm3, %v597_v5 }
  0x14   :  { %566 = vmatprep.subr.bf16.mxu0 %v599_v15 }
  0x16   :  { %483 = vmatmul.mubr.msk.f32.vlgmr.msra.gmra.mrb[0].mxu0 %vm44_vm0, %v15_v6 }
  0x17   :  { %485 = vmatprep.mubr.msk.f32.mxu0 %vm44_vm0, %v16_v7 }
  0x1a   :  { %486 = vmatmul.mubr.msk.f32.gmra.mrb[2].mxu0 %vm44_vm0, %v17_v8 }
  0x1b   :  { %488 = vmatprep.mubr.msk.f32.mxu0 %vm44_vm0, %v18_v9 }
  0x1e   :  { %489 = vmatmul.mubr.msk.f32.gmra.mrb[4].mxu0 %vm44_vm0, %v19_v10 }
  0x1f   :  { %491 = vmatprep.mubr.msk.f32.mxu0 %vm44_vm0, %v20_v11 }
  0x22   :  { %492 = vmatmul.mubr.msk.f32.gmra.mrb[6].mxu0 %vm44_vm0, %v21_v12 }
  0x23   :  { %494 = vmatprep.mubr.msk.f32.mxu0 %vm44_vm0, %v22_v13 }
  0x26   :  { %495 = vmatmul.mubr.msk.f32.gmra.mrb[8].mxu0 %vm44_vm0, %v23_v14 }
  0x27   :  { %517 = vmatprep.mubr.msk.f32.mxu0 %vm600_vm4, %v601_v16 }
  0xe9   :  { %v484_v17 = vpop.f32.mrb[0].mxu0 }
  0xea   :  { %v145_v18 = vpop.f32.mrb[1].mxu0 }
  0xeb   :  { %v567_v19 = vpack.c.bf16 %v484_v17, %v145_v18 }
  0xed   :  { %v487_v20 = vpop.f32.mrb[2].mxu0  ;;  %568 = vmatpush3.bf16.msra.mxu0 %v567_v19  ;;  %586 = vmatpush3.bf16.msra.mxu1 %v567_v19 }
  0xee   :  { %v155_v21 = vpop.f32.mrb[3].mxu0  ;;  %569 = vmatprep.subr.bf16.mxu0 %v599_v15  ;;  %582 = vmatprep.subr.bf16.mxu1 %v599_v15 }
  0xef   :  { %v570_v22 = vpack.c.bf16 %v487_v20, %v155_v21 }
  0xf1   :  { %v490_v23 = vpop.f32.mrb[4].mxu0  ;;  %571 = vmatpush3.bf16.msra.mxu0 %v570_v22  ;;  %587 = vmatpush3.bf16.msra.mxu1 %v570_v22 }
  0xf2   :  { %v165_v24 = vpop.f32.mrb[5].mxu0  ;;  %572 = vmatprep.subr.bf16.mxu0 %v599_v15  ;;  %583 = vmatprep.subr.bf16.mxu1 %v599_v15 }
  0xf3   :  { %v573_v25 = vpack.c.bf16 %v490_v23, %v165_v24 }
  0xf5   :  { %v493_v26 = vpop.f32.mrb[6].mxu0  ;;  %574 = vmatpush3.bf16.msra.mxu0 %v573_v25  ;;  %588 = vmatpush3.bf16.msra.mxu1 %v573_v25 }
  0xf6   :  { %v175_v27 = vpop.f32.mrb[7].mxu0  ;;  %575 = vmatprep.subr.bf16.mxu0 %v599_v15  ;;  %584 = vmatprep.subr.bf16.mxu1 %v599_v15 }
  0xf7   :  { %v576_v28 = vpack.c.bf16 %v493_v26, %v175_v27 }
  0xf9   :  { %v496_v29 = vpop.f32.mrb[8].mxu0  ;;  %577 = vmatpush3.bf16.msra.mxu0 %v576_v28  ;;  %589 = vmatpush3.bf16.msra.mxu1 %v576_v28 }
  0xfa   :  { %v185_v32 = vpop.f32.mrb[9].mxu0  ;;  %578 = vmatprep.subr.bf16.mxu0 %v599_v15  ;;  %585 = vmatprep.subr.bf16.mxu1 %v599_v15 }
  0xfb   :  { %v579_v33 = vpack.c.bf16 %v496_v29, %v185_v32 }
  0xfd   :  { %580 = vmatpush3.bf16.msra.mxu0 %v579_v33  ;;  %590 = vmatpush3.bf16.msra.mxu1 %v579_v33 }
 0x100   :  { %524 = vmatmul.mubr.msk.f32.vlgmr.msra.gmra.mrb[0].mxu1 %vm212_vm5, %v407_v34  ;;  %518 = vmatmul.mubr.msk.f32.vlgmr.msra.gmra.mrb[10].mxu0 %vm212_vm5, %v403_v35 }
 0x101   :  { %526 = vmatprep.mubr.msk.f32.mxu1 %vm600_vm4, %v601_v16  ;;  %520 = vmatprep.mubr.msk.f32.mxu0 %vm600_vm4, %v601_v16 }
 0x104   :  { %527 = vmatmul.mubr.msk.f32.gmra.mrb[2].mxu1 %vm212_vm5, %v408_v36  ;;  %521 = vmatmul.mubr.msk.f32.gmra.mrb[12].mxu0 %vm212_vm5, %v404_v37 }
 0x105   :  { %529 = vmatprep.mubr.msk.f32.mxu1 %vm600_vm4, %v601_v16 }
 0x108   :  { %530 = vmatmul.mubr.msk.f32.gmra.mrb[4].mxu1 %vm212_vm5, %v411_v39 }
 0x109   :  { %532 = vmatprep.mubr.msk.f32.mxu1 %vm600_vm4, %v601_v16 }
 0x10c   :  { %533 = vmatmul.mubr.msk.f32.gmra.mrb[6].mxu1 %vm212_vm5, %v412_v40 }
 0x10d   :  { %535 = vmatprep.mubr.msk.f32.mxu1 %vm600_vm4, %v601_v16 }
 0x110   :  { %536 = vmatmul.mubr.msk.f32.gmra.mrb[8].mxu1 %vm212_vm5, %v415_v42 }
 0x111   :  { %538 = vmatprep.mubr.msk.f32.mxu1 %vm600_vm4, %v601_v16 }
 0x114   :  { %539 = vmatmul.mubr.msk.f32.gmra.mrb[10].mxu1 %vm212_vm5, %v416_v43 }
 0x115   :  { %541 = vmatprep.mubr.msk.f32.mxu1 %vm600_vm4, %v601_v16 }
 0x118   :  { %542 = vmatmul.mubr.msk.f32.gmra.mrb[12].mxu1 %vm212_vm5, %v211_v45 }
 0x1d3   :  { %v316_v46 = vpop.f32.mrb[0].mxu1  ;;  %v306_v47 = vpop.f32.mrb[10].mxu0 }
 0x1d4   :  { %353 = vst.msk [vmem:[%s757_s3 + $0x10] sm:$0xff] %vm350_vm6, %v316_v46  ;;  %v525_v48 = vpop.f32.mrb[1].mxu1  ;;  %351 = vst.msk [vmem:[%s757_s3] sm:$0xff] %vm350_vm6, %v306_v47  ;;  %v519_v49 = vpop.f32.mrb[11].mxu0 }
 0x1d7   :  { %v321_v50 = vpop.f32.mrb[2].mxu1  ;;  %v311_v51 = vpop.f32.mrb[12].mxu0 }
 0x1d8   :  { %354 = vst.msk [vmem:[%s757_s3 + $0x18] sm:$0xff] %vm350_vm6, %v321_v50  ;;  %v528_v52 = vpop.f32.mrb[3].mxu1  ;;  %352 = vst.msk [vmem:[%s757_s3 + $0x8] sm:$0xff] %vm350_vm6, %v311_v51  ;;  %v522_v53 = vpop.f32.mrb[13].mxu0 }
 0x1db   :  { %v326_v54 = vpop.f32.mrb[4].mxu1 }
 0x1dc   :  { %355 = vst.msk [vmem:[%s757_s3 + $0x20] sm:$0xff] %vm350_vm6, %v326_v54  ;;  %v531_v55 = vpop.f32.mrb[5].mxu1 }
 0x1df   :  { %v331_v56 = vpop.f32.mrb[6].mxu1 }
 0x1e0   :  { %356 = vst.msk [vmem:[%s757_s3 + $0x28] sm:$0xff] %vm350_vm6, %v331_v56  ;;  %v534_v57 = vpop.f32.mrb[7].mxu1 }
 0x1e3   :  { %v336_v58 = vpop.f32.mrb[8].mxu1 }
 0x1e4   :  { %357 = vst.msk [vmem:[%s757_s3 + $0x30] sm:$0xff] %vm350_vm6, %v336_v58  ;;  %v537_v59 = vpop.f32.mrb[9].mxu1 }
 0x1e7   :  { %v341_v60 = vpop.f32.mrb[10].mxu1 }
 0x1e8   :  { %358 = vst.msk [vmem:[%s757_s3 + $0x38] sm:$0xff] %vm350_vm6, %v341_v60  ;;  %v540_v61 = vpop.f32.mrb[11].mxu1 }
 0x1eb   :  { %v346_v62 = vpop.f32.mrb[12].mxu1 }
 0x1ec   :  { %360 = vst.msk [vmem:[%s757_s3 + $0x40] sm:$0xf] %vm359_vm7, %v346_v62  ;;  %v543_v63 = vpop.f32.mrb[13].mxu1 }

// kernel: forward.5
= control target key start
LH: loop header
LB: loop body
LE: loop exit
PB: predicated region body
PF: predicated region fallthrough
CT: control target
= control target key end

     0   :  { %v366_v0 = vmov 0.0|0.0   ;;  %vm367_vm0 = vmmov 0   ;;  %v368_v2 = vmov 0.0   ;;  %vm49_vm1 = vcmask 1042432   ;;  %s439_s1 = inlined_call_operand.vmem [shape: bf16[51,11], index: 1, kind: input, shape index: {}]   ;;  %s440_s0 = inlined_call_operand.vmem [shape: f32[36,51], index: 0, kind: input, shape index: {}]   ;;  %s441_s2 = inlined_call_operand.vmem [shape: bf16[20,36], index: 2, kind: input, shape index: {}]   ;;  %s442_s3 = inlined_call_operand.vmem [shape: f32[20,11], index: 3, kind: output, shape index: {}]  }
   0x1   :  { %348 = vmatprep.subr.bf16.mxu0 %v366_v0  ;;  %v263_v1 = vld [vmem:[%s439_s1] sm:$0xff]   ;;  %314 = vmatprep.mubr.msk.f32.mxu0 %vm367_vm0, %v368_v2  ;;  %v278_v3 = vld [vmem:[%s439_s1 + $0x8] sm:$0xff]   ;;  %v279_v4 = vld [vmem:[%s439_s1 + $0x10] sm:$0xff]   ;;  %vm33_vm2 = vcmask 416768   ;;  %vm159_vm3 = vcmask 1043456   ;;  %vm149_vm4 = vcmask 293888  }
   0x2   :  { %350 = vmatpush3.bf16.msra.mxu0 %v263_v1  ;;  %357 = vmatprep.subr.bf16.mxu1 %v366_v0  ;;  %v25_v5 = vld [vmem:[%s439_s1 + $0x18] sm:$0x3]  ;;  %v14_v7 = vld [vmem:[%s440_s0] sm:$0xff]  ;;  %v15_v8 = vld [vmem:[%s440_s0 + $0x8] sm:$0xff]  ;;  %vm243_vm5 = vcmask 89088   ;;  %vm246_vm6 = vcmask 84992  }
   0x3   :  { %351 = vmatprep.subr.bf16.mxu0 %v366_v0  ;;  %339 = vmatprep.mubr.msk.f32.mxu1 %vm367_vm0, %v368_v2  ;;  %v32_v6 = vunpack.c.l.bf16 %v25_v5  ;;  %v16_v9 = vld [vmem:[%s440_s0 + $0x10] sm:$0xff]  ;;  %v17_v10 = vld [vmem:[%s440_s0 + $0x18] sm:$0xff]  ;;  %v18_v11 = vld [vmem:[%s440_s0 + $0x20] sm:$0xf] }
   0x4   :  { %v275_v22 = vld [vmem:[%s441_s2] sm:$0xff]   ;;  %v145_v27 = vld [vmem:[%s441_s2 + $0x8] sm:$0x3] }
   0x5   :  { %v276_v24 = vunpack.c.l.bf16 %v275_v22  ;;  %v277_v26 = vunpack.c.h.bf16 %v275_v22  ;;  %v148_v28 = vunpack.c.l.bf16 %v145_v27 }
   0x6   :  { %353 = vmatpush3.bf16.msra.mxu0 %v278_v3 }
   0x7   :  { %354 = vmatprep.subr.bf16.mxu0 %v366_v0 }
   0xa   :  { %356 = vmatpush3.bf16.msra.mxu0 %v279_v4 }
   0xb   :  { %312 = vmatprep.subr.mxu0 %v368_v2 }
   0xe   :  { %313 = vmatpush3.msk.msra.mxu0 %vm49_vm1, %v32_v6 }
   0xf   :  { %315 = vmatmul.mubr.msk.f32.vlgmr.msra.gmra.mrb[0].mxu0 %vm33_vm2, %v14_v7 }
  0x10   :  { %317 = vmatprep.mubr.msk.f32.mxu0 %vm367_vm0, %v368_v2 }
  0x13   :  { %318 = vmatmul.mubr.msk.f32.gmra.mrb[2].mxu0 %vm33_vm2, %v15_v8 }
  0x14   :  { %320 = vmatprep.mubr.msk.f32.mxu0 %vm367_vm0, %v368_v2 }
  0x17   :  { %321 = vmatmul.mubr.msk.f32.gmra.mrb[4].mxu0 %vm33_vm2, %v16_v9 }
  0x18   :  { %323 = vmatprep.mubr.msk.f32.mxu0 %vm367_vm0, %v368_v2 }
  0x1b   :  { %324 = vmatmul.mubr.msk.f32.gmra.mrb[6].mxu0 %vm33_vm2, %v17_v10 }
  0x1c   :  { %326 = vmatprep.mubr.msk.f32.mxu0 %vm367_vm0, %v368_v2 }
  0x1f   :  { %327 = vmatmul.mubr.msk.f32.gmra.mrb[8].mxu0 %vm33_vm2, %v18_v11 }
  0xe2   :  { %v119_v12 = vpop.f32.mrb[0].mxu0 }
  0xe3   :  { %v316_v13 = vpop.f32.mrb[1].mxu0 }
  0xe6   :  { %v124_v14 = vpop.f32.mrb[2].mxu0 }
  0xe7   :  { %v358_v15 = vpack.c.bf16 %v124_v14, %v119_v12  ;;  %v319_v16 = vpop.f32.mrb[3].mxu0 }
  0xe9   :  { %359 = vmatpush3.bf16.msra.mxu1 %v358_v15 }
  0xea   :  { %v129_v17 = vpop.f32.mrb[4].mxu0  ;;  %360 = vmatprep.subr.bf16.mxu1 %v366_v0 }
  0xeb   :  { %v322_v18 = vpop.f32.mrb[5].mxu0 }
  0xee   :  { %v134_v19 = vpop.f32.mrb[6].mxu0 }
  0xef   :  { %v361_v20 = vpack.c.bf16 %v134_v19, %v129_v17  ;;  %v325_v21 = vpop.f32.mrb[7].mxu0 }
  0xf1   :  { %362 = vmatpush3.bf16.msra.mxu1 %v361_v20 }
  0xf2   :  { %v139_v23 = vpop.f32.mrb[8].mxu0  ;;  %337 = vmatprep.subr.mxu1 %v368_v2 }
  0xf3   :  { %v328_v25 = vpop.f32.mrb[9].mxu0 }
  0xf5   :  { %338 = vmatpush3.msk.msra.mxu1 %vm159_vm3, %v139_v23 }
  0xf6   :  { %340 = vmatmul.mubr.msk.f32.vlgmr.msra.gmra.mrb[0].mxu1 %vm149_vm4, %v276_v24 }
  0xf7   :  { %342 = vmatprep.mubr.msk.f32.mxu1 %vm367_vm0, %v368_v2 }
  0xfa   :  { %343 = vmatmul.mubr.msk.f32.gmra.mrb[2].mxu1 %vm149_vm4, %v277_v26 }
  0xfb   :  { %345 = vmatprep.mubr.msk.f32.mxu1 %vm367_vm0, %v368_v2 }
  0xfe   :  { %346 = vmatmul.mubr.msk.f32.gmra.mrb[4].mxu1 %vm149_vm4, %v148_v28 }
 0x1c9   :  { %v229_v29 = vpop.f32.mrb[0].mxu1 }
 0x1ca   :  { %244 = vst.msk [vmem:[%s442_s3] sm:$0xff] %vm243_vm5, %v229_v29  ;;  %v341_v30 = vpop.f32.mrb[1].mxu1 }
 0x1cd   :  { %v234_v31 = vpop.f32.mrb[2].mxu1 }
 0x1ce   :  { %245 = vst.msk [vmem:[%s442_s3 + $0x8] sm:$0xff] %vm243_vm5, %v234_v31  ;;  %v344_v32 = vpop.f32.mrb[3].mxu1 }
 0x1d1   :  { %v239_v33 = vpop.f32.mrb[4].mxu1 }
 0x1d2   :  { %247 = vst.msk [vmem:[%s442_s3 + $0x10] sm:$0xf] %vm246_vm6, %v239_v33  ;;  %v347_v34 = vpop.f32.mrb[5].mxu1 }

</bundles_post_ra>
